<compile_context>
chip_gen: v6e
topology: v6e:2x2x1
jax: 0.10.0
libtpu: 0.0.40
codegen_flags: <defaults>
</compile_context>

<pallas_src>
import functools

import jax
import jax.numpy as jnp
from jax import lax
from jax.experimental import pallas as pl
from jax.experimental.pallas import tpu as pltpu

HIDDEN = 32       # hidden_dim of LSTMGenerator
OUT_DIM = 6       # num_passwd
LANES = 128       # f32 lane width; equals 4*HIDDEN
SUBLANES = 8      # f32 sublane tile


def _round_up(n, m):
    return (n + m - 1) // m * m


def _eniac_lstm_kernel(x_ref, w_ref, out_ref, h_all_scr, *, seq_len, bp, x_cols):
    """Whole sequence in one kernel invocation.

    x_ref:     (T*BP, x_cols)  time-major; col in_dim is a ones column (bias),
                               trailing cols zero-padded; BP = 8-aligned batch.
    w_ref:     (n_rows, 128)   packed weight slab:
                 rows [0, x_cols)            W_ih^T with bias row (g cols x2)
                 rows [x_cols, x_cols+H)     W_hh^T              (g cols x2)
                 rows [x_cols+H, x_cols+2H)  W_lin^T lane-padded to 128
                 row   x_cols+2H             b_lin  lane-padded to 128
    out_ref:   (T*BP, 128)     lane-dense output (cols >= OUT_DIM are junk)
    h_all_scr: (T*BP, H)       VMEM scratch holding every h_t
    """
    T, BP, H = seq_len, bp, HIDDEN

    w = w_ref[...]
    wihb = w[0:x_cols, :]                            # (x_cols, 4H)
    whh = w[x_cols:x_cols + H, :]                    # (H, 4H)
    wlin = w[x_cols + H:x_cols + 2 * H, :]           # (H, 128)
    blin = w[x_cols + 2 * H:x_cols + 2 * H + 1, :]   # (1, 128)

    # Prologue: input projection (+ folded bias) hoisted off the serial chain.
    gates_x = jnp.dot(x_ref[...], wihb,
                      preferred_element_type=jnp.float32)        # (T*BP, 4H)

    h = jnp.zeros((BP, H), jnp.float32)
    c = jnp.zeros((BP, H), jnp.float32)

    # TODO(synk): if T or the padded batch grows, switch to
    # lax.fori_loop(..., unroll=2 or 4) to bound live ranges; with T=8 and
    # BP=8 the fully unrolled loop fits comfortably in 64 vregs.
    for t in range(T):
        r0 = t * BP   # static, sublane-tile aligned (BP == 8)
        gates = gates_x[r0:r0 + BP, :] + jnp.dot(
            h, whh, preferred_element_type=jnp.float32)          # (BP, 4H)
        # One whole-tile EUP pass: g-gate columns were pre-doubled at pack
        # time, so tanh(z) == 2*sigmoid(2z) - 1 below. Gate order: i, f, g, o.
        s = jax.nn.sigmoid(gates)
        i_g = s[:, 0 * H:1 * H]
        f_g = s[:, 1 * H:2 * H]
        g_g = 2.0 * s[:, 2 * H:3 * H] - 1.0
        o_g = s[:, 3 * H:4 * H]
        c = f_g * c + i_g * g_g
        h = o_g * jnp.tanh(c)
        h_all_scr[r0:r0 + BP, :] = h   # aligned, static, unmasked-sublane store

    # Epilogue: hoisted Linear(32 -> 128-padded) + tanh; one lane-dense store.
    out_ref[...] = jnp.tanh(
        jnp.dot(h_all_scr[...], wlin, preferred_element_type=jnp.float32)
        + blin)


def eniac_generator_forward(x, w_slab):
    """x: (B, T, D_in) float32, w_slab from pack_params().
    Returns peaks: (B, T, OUT_DIM) float32.

    Note: the original ENIACGenerator.forward literally returns the int 1 (and
    calls pdb.set_trace()); here we return the computed `peaks` tensor.
    """
    B, T, D_in = x.shape
    BP = _round_up(B, SUBLANES)              # sublane-aligned per-step rows
    x_cols = _round_up(D_in + 1, SUBLANES)   # features + ones(bias) column

    # Time-major, pad batch rows to BP, append ones column (bias), pad features.
    xt = jnp.transpose(x, (1, 0, 2)).astype(jnp.float32)        # (T, B, D)
    xt = jnp.pad(xt, ((0, 0), (0, BP - B), (0, 0)))             # (T, BP, D)
    xt = jnp.concatenate([xt, jnp.ones((T, BP, 1), jnp.float32)], axis=-1)
    xt = jnp.pad(xt, ((0, 0), (0, 0), (0, x_cols - (D_in + 1))))
    x_flat = xt.reshape(T * BP, x_cols)

    kernel = functools.partial(_eniac_lstm_kernel,
                               seq_len=T, bp=BP, x_cols=x_cols)

    grid_spec = pltpu.PrefetchScalarGridSpec(
        num_scalar_prefetch=0,
        grid=(1,),   # single invocation: the time loop lives inside the body
        in_specs=[
            pl.BlockSpec((T * BP, x_cols), lambda i: (0, 0)),   # x (flat, padded)
            pl.BlockSpec(w_slab.shape, lambda i: (0, 0)),       # packed weights
        ],
        out_specs=pl.BlockSpec((T * BP, LANES), lambda i: (0, 0)),
        scratch_shapes=[
            pltpu.VMEM((T * BP, HIDDEN), jnp.float32),  # all h_t for epilogue
        ],
    )

    y_flat = pl.pallas_call(
        kernel,
        out_shape=jax.ShapeDtypeStruct((T * BP, LANES), jnp.float32),
        grid_spec=grid_spec,
        compiler_params=pltpu.CompilerParams(
            dimension_semantics=("arbitrary",)),  # sequential recurrence
    )(x_flat, w_slab)

    # Drop pad rows / pad lanes, back to (B, T, OUT_DIM).
    y = y_flat.reshape(T, BP, LANES)[:, :B, :OUT_DIM]
    return jnp.transpose(y, (1, 0, 2))


def init_natural_params(key, in_dim):
    """PyTorch-layout nn.LSTM / nn.Linear parameters (deterministic)."""
    k = 1.0 / jnp.sqrt(jnp.float32(HIDDEN))
    ks = jax.random.split(key, 6)
    w_ih = jax.random.uniform(ks[0], (4 * HIDDEN, in_dim), jnp.float32, -k, k)
    w_hh = jax.random.uniform(ks[1], (4 * HIDDEN, HIDDEN), jnp.float32, -k, k)
    b_ih = jax.random.uniform(ks[2], (4 * HIDDEN,), jnp.float32, -k, k)
    b_hh = jax.random.uniform(ks[3], (4 * HIDDEN,), jnp.float32, -k, k)
    w_lin = jax.random.uniform(ks[4], (OUT_DIM, HIDDEN), jnp.float32, -k, k)
    b_lin = jax.random.uniform(ks[5], (OUT_DIM,), jnp.float32, -k, k)
    return (w_ih, w_hh, b_ih, b_hh, w_lin, b_lin)


def pack_params(natural_params, in_dim):
    """One-time host-side packing of all weights into a single (n_rows, 128) slab.

    - bias (b_ih + b_hh) becomes an extra row of W_ih^T (paired with the ones
      column appended to x in the wrapper);
    - g-gate columns [2H, 3H) of the W_ih / W_hh / bias sections are scaled by
      2 so the kernel needs only one sigmoid pass (tanh(z) = 2*sigmoid(2z)-1);
    - W_lin^T and b_lin are padded to 128 lanes for a lane-dense output store.
    """
    w_ih, w_hh, b_ih, b_hh, w_lin, b_lin = natural_params
    H = HIDDEN
    assert 4 * H == LANES
    x_cols = _round_up(in_dim + 1, SUBLANES)

    gscale = jnp.concatenate([jnp.ones((2 * H,), jnp.float32),
                              jnp.full((H,), 2.0, jnp.float32),
                              jnp.ones((H,), jnp.float32)])

    wihb = jnp.zeros((x_cols, 4 * H), jnp.float32)
    wihb = wihb.at[:in_dim, :].set(jnp.transpose(w_ih))
    wihb = wihb.at[in_dim, :].set(b_ih + b_hh)
    wihb = wihb * gscale[None, :]

    whh = jnp.transpose(w_hh) * gscale[None, :]

    wlin_pad = jnp.zeros((H, LANES), jnp.float32).at[:, :OUT_DIM].set(
        jnp.transpose(w_lin))
    blin_pad = jnp.zeros((LANES,), jnp.float32).at[:OUT_DIM].set(b_lin)

    n_rows = _round_up(x_cols + 2 * H + 1, SUBLANES)
    slab = jnp.zeros((n_rows, LANES), jnp.float32)
    slab = slab.at[0:x_cols, :].set(wihb)
    slab = slab.at[x_cols:x_cols + H, :].set(whh)
    slab = slab.at[x_cols + H:x_cols + 2 * H, :].set(wlin_pad)
    slab = slab.at[x_cols + 2 * H, :].set(blin_pad)
    return slab


def reference_forward(x, natural_params):
    """Pure-JAX reference (lax.scan LSTM) using the unpacked parameters."""
    w_ih, w_hh, b_ih, b_hh, w_lin, b_lin = natural_params
    B = x.shape[0]
    H = HIDDEN

    def step(carry, x_t):
        h, c = carry
        gates = x_t @ w_ih.T + b_ih + h @ w_hh.T + b_hh
        i_g = jax.nn.sigmoid(gates[:, 0 * H:1 * H])
        f_g = jax.nn.sigmoid(gates[:, 1 * H:2 * H])
        g_g = jnp.tanh(gates[:, 2 * H:3 * H])
        o_g = jax.nn.sigmoid(gates[:, 3 * H:4 * H])
        c = f_g * c + i_g * g_g
        h = o_g * jnp.tanh(c)
        return (h, c), jnp.tanh(h @ w_lin.T + b_lin)

    init = (jnp.zeros((B, H), jnp.float32), jnp.zeros((B, H), jnp.float32))
    _, ys = lax.scan(step, init, jnp.transpose(x, (1, 0, 2)))
    return jnp.transpose(ys, (1, 0, 2))


if __name__ == "__main__":
    IN_DIM = 16   # in_dim (noise size) of ENIACGenerator
    B, T = 4, 8

    key = jax.random.PRNGKey(0)
    k_x, k_p = jax.random.split(key)
    x = jax.random.normal(k_x, (B, T, IN_DIM), jnp.float32)
    natural = init_natural_params(k_p, IN_DIM)
    w_slab = pack_params(natural, IN_DIM)   # one-time packing, off the hot path

    peaks = jax.jit(eniac_generator_forward)(x, w_slab)
    peaks = jax.block_until_ready(peaks)

    ref = reference_forward(x, natural)
    assert peaks.shape == (B, T, OUT_DIM)
    assert jnp.allclose(peaks, ref, atol=1e-4, rtol=1e-4), (
        "max abs diff: %g" % float(jnp.max(jnp.abs(peaks - ref))))

    # TODO(synk): original forward returns the Python constant 1 (and calls
    # pdb.set_trace()); we return the computed `peaks` tensor instead.
    print("KERNEL_OK")
</pallas_src>

<mosaic_0001>
module attributes {stable_mosaic.version = 11 : i64} {
  func.func @_eniac_lstm_kernel(%arg0: i32, %arg1: memref<64x24xf32, #tpu.memory_space<vmem>>, %arg2: memref<96x128xf32, #tpu.memory_space<vmem>>, %arg3: memref<64x128xf32, #tpu.memory_space<vmem>>, %arg4: memref<64x32xf32, #tpu.memory_space<vmem>>) attributes {dimension_semantics = [#tpu.dimension_semantics<arbitrary>], iteration_bounds = array<i64: 1>, scalar_prefetch = 0 : i64, scratch_operands = 1 : i64, tpu.core_type = #tpu.core_type<tc>, window_params = [{pipeline_mode = #tpu.pipeline_mode<synchronous>, transform_indices = @transform_0, window_bounds = array<i64: 64, 24>}, {pipeline_mode = #tpu.pipeline_mode<synchronous>, transform_indices = @transform_1, window_bounds = array<i64: 96, 128>}, {pipeline_mode = #tpu.pipeline_mode<synchronous>, transform_indices = @transform_2, window_bounds = array<i64: 64, 128>}]} {
    %c0 = arith.constant 0 : index
    %c0_0 = arith.constant 0 : index
    %0 = vector.load %arg2[%c0, %c0_0] : memref<96x128xf32, #tpu.memory_space<vmem>>, vector<96x128xf32>
    %1 = vector.extract_strided_slice %0 {offsets = [0, 0], sizes = [24, 128], strides = [1, 1]} : vector<96x128xf32> to vector<24x128xf32>
    %2 = vector.extract_strided_slice %0 {offsets = [24, 0], sizes = [32, 128], strides = [1, 1]} : vector<96x128xf32> to vector<32x128xf32>
    %3 = vector.extract_strided_slice %0 {offsets = [56, 0], sizes = [32, 128], strides = [1, 1]} : vector<96x128xf32> to vector<32x128xf32>
    %4 = vector.extract_strided_slice %0 {offsets = [88, 0], sizes = [1, 128], strides = [1, 1]} : vector<96x128xf32> to vector<1x128xf32>
    %c0_1 = arith.constant 0 : index
    %c0_2 = arith.constant 0 : index
    %5 = vector.load %arg1[%c0_1, %c0_2] : memref<64x24xf32, #tpu.memory_space<vmem>>, vector<64x24xf32>
    %cst = arith.constant dense<0.000000e+00> : vector<64x128xf32>
    %6 = tpu.matmul %5, %1, %cst {dimension_numbers = #tpu.dot_dimension_numbers<[1], [0], [0], [1], [0, 0, 1, 1], [], []>} : vector<64x24xf32>, vector<24x128xf32>, vector<64x128xf32> -> vector<64x128xf32>
    %cst_3 = arith.constant 0.000000e+00 : f32
    %7 = vector.broadcast %cst_3 : f32 to vector<8x32xf32>
    %cst_4 = arith.constant 0.000000e+00 : f32
    %8 = vector.broadcast %cst_4 : f32 to vector<8x32xf32>
    %9 = vector.extract_strided_slice %6 {offsets = [0, 0], sizes = [8, 128], strides = [1, 1]} : vector<64x128xf32> to vector<8x128xf32>
    %cst_5 = arith.constant dense<0.000000e+00> : vector<8x128xf32>
    %10 = tpu.matmul %7, %2, %cst_5 {dimension_numbers = #tpu.dot_dimension_numbers<[1], [0], [0], [1], [0, 0, 1, 1], [], []>} : vector<8x32xf32>, vector<32x128xf32>, vector<8x128xf32> -> vector<8x128xf32>
    %11 = arith.addf %9, %10 : vector<8x128xf32>
    %12 = arith.negf %11 : vector<8x128xf32>
    %13 = math.exp %12 : vector<8x128xf32>
    %cst_6 = arith.constant 1.000000e+00 : f32
    %14 = vector.broadcast %cst_6 : f32 to vector<8x128xf32>
    %15 = arith.addf %14, %13 : vector<8x128xf32>
    %16 = arith.divf %14, %15 : vector<8x128xf32>
    %17 = vector.extract_strided_slice %16 {offsets = [0, 0], sizes = [8, 32], strides = [1, 1]} : vector<8x128xf32> to vector<8x32xf32>
    %18 = vector.extract_strided_slice %16 {offsets = [0, 32], sizes = [8, 32], strides = [1, 1]} : vector<8x128xf32> to vector<8x32xf32>
    %19 = vector.extract_strided_slice %16 {offsets = [0, 64], sizes = [8, 32], strides = [1, 1]} : vector<8x128xf32> to vector<8x32xf32>
    %cst_7 = arith.constant 2.000000e+00 : f32
    %20 = vector.broadcast %cst_7 : f32 to vector<8x32xf32>
    %21 = arith.mulf %20, %19 : vector<8x32xf32>
    %cst_8 = arith.constant 1.000000e+00 : f32
    %22 = vector.broadcast %cst_8 : f32 to vector<8x32xf32>
    %23 = arith.subf %21, %22 : vector<8x32xf32>
    %24 = vector.extract_strided_slice %16 {offsets = [0, 96], sizes = [8, 32], strides = [1, 1]} : vector<8x128xf32> to vector<8x32xf32>
    %25 = arith.mulf %18, %8 : vector<8x32xf32>
    %26 = arith.mulf %17, %23 : vector<8x32xf32>
    %27 = arith.addf %25, %26 : vector<8x32xf32>
    %28 = math.tanh %27 : vector<8x32xf32>
    %29 = arith.mulf %24, %28 : vector<8x32xf32>
    %c0_9 = arith.constant 0 : index
    %c0_10 = arith.constant 0 : index
    %30 = vector.load %arg4[%c0_9, %c0_10] : memref<64x32xf32, #tpu.memory_space<vmem>>, vector<8x32xf32>
    tpu.vector_store %arg4[%c0_9, %c0_10], %29 {strides = array<i32>} : memref<64x32xf32, #tpu.memory_space<vmem>>, vector<8x32xf32>,
    %31 = vector.extract_strided_slice %6 {offsets = [8, 0], sizes = [8, 128], strides = [1, 1]} : vector<64x128xf32> to vector<8x128xf32>
    %cst_11 = arith.constant dense<0.000000e+00> : vector<8x128xf32>
    %32 = tpu.matmul %29, %2, %cst_11 {dimension_numbers = #tpu.dot_dimension_numbers<[1], [0], [0], [1], [0, 0, 1, 1], [], []>} : vector<8x32xf32>, vector<32x128xf32>, vector<8x128xf32> -> vector<8x128xf32>
    %33 = arith.addf %31, %32 : vector<8x128xf32>
    %34 = arith.negf %33 : vector<8x128xf32>
    %35 = math.exp %34 : vector<8x128xf32>
    %cst_12 = arith.constant 1.000000e+00 : f32
    %36 = vector.broadcast %cst_12 : f32 to vector<8x128xf32>
    %37 = arith.addf %36, %35 : vector<8x128xf32>
    %38 = arith.divf %36, %37 : vector<8x128xf32>
    %39 = vector.extract_strided_slice %38 {offsets = [0, 0], sizes = [8, 32], strides = [1, 1]} : vector<8x128xf32> to vector<8x32xf32>
    %40 = vector.extract_strided_slice %38 {offsets = [0, 32], sizes = [8, 32], strides = [1, 1]} : vector<8x128xf32> to vector<8x32xf32>
    %41 = vector.extract_strided_slice %38 {offsets = [0, 64], sizes = [8, 32], strides = [1, 1]} : vector<8x128xf32> to vector<8x32xf32>
    %cst_13 = arith.constant 2.000000e+00 : f32
    %42 = vector.broadcast %cst_13 : f32 to vector<8x32xf32>
    %43 = arith.mulf %42, %41 : vector<8x32xf32>
    %cst_14 = arith.constant 1.000000e+00 : f32
    %44 = vector.broadcast %cst_14 : f32 to vector<8x32xf32>
    %45 = arith.subf %43, %44 : vector<8x32xf32>
    %46 = vector.extract_strided_slice %38 {offsets = [0, 96], sizes = [8, 32], strides = [1, 1]} : vector<8x128xf32> to vector<8x32xf32>
    %47 = arith.mulf %40, %27 : vector<8x32xf32>
    %48 = arith.mulf %39, %45 : vector<8x32xf32>
    %49 = arith.addf %47, %48 : vector<8x32xf32>
    %50 = math.tanh %49 : vector<8x32xf32>
    %51 = arith.mulf %46, %50 : vector<8x32xf32>
    %c8 = arith.constant 8 : index
    %c0_15 = arith.constant 0 : index
    %52 = vector.load %arg4[%c8, %c0_15] : memref<64x32xf32, #tpu.memory_space<vmem>>, vector<8x32xf32>
    tpu.vector_store %arg4[%c8, %c0_15], %51 {strides = array<i32>} : memref<64x32xf32, #tpu.memory_space<vmem>>, vector<8x32xf32>,
    %53 = vector.extract_strided_slice %6 {offsets = [16, 0], sizes = [8, 128], strides = [1, 1]} : vector<64x128xf32> to vector<8x128xf32>
    %cst_16 = arith.constant dense<0.000000e+00> : vector<8x128xf32>
    %54 = tpu.matmul %51, %2, %cst_16 {dimension_numbers = #tpu.dot_dimension_numbers<[1], [0], [0], [1], [0, 0, 1, 1], [], []>} : vector<8x32xf32>, vector<32x128xf32>, vector<8x128xf32> -> vector<8x128xf32>
    %55 = arith.addf %53, %54 : vector<8x128xf32>
    %56 = arith.negf %55 : vector<8x128xf32>
    %57 = math.exp %56 : vector<8x128xf32>
    %cst_17 = arith.constant 1.000000e+00 : f32
    %58 = vector.broadcast %cst_17 : f32 to vector<8x128xf32>
    %59 = arith.addf %58, %57 : vector<8x128xf32>
    %60 = arith.divf %58, %59 : vector<8x128xf32>
    %61 = vector.extract_strided_slice %60 {offsets = [0, 0], sizes = [8, 32], strides = [1, 1]} : vector<8x128xf32> to vector<8x32xf32>
    %62 = vector.extract_strided_slice %60 {offsets = [0, 32], sizes = [8, 32], strides = [1, 1]} : vector<8x128xf32> to vector<8x32xf32>
    %63 = vector.extract_strided_slice %60 {offsets = [0, 64], sizes = [8, 32], strides = [1, 1]} : vector<8x128xf32> to vector<8x32xf32>
    %cst_18 = arith.constant 2.000000e+00 : f32
    %64 = vector.broadcast %cst_18 : f32 to vector<8x32xf32>
    %65 = arith.mulf %64, %63 : vector<8x32xf32>
    %cst_19 = arith.constant 1.000000e+00 : f32
    %66 = vector.broadcast %cst_19 : f32 to vector<8x32xf32>
    %67 = arith.subf %65, %66 : vector<8x32xf32>
    %68 = vector.extract_strided_slice %60 {offsets = [0, 96], sizes = [8, 32], strides = [1, 1]} : vector<8x128xf32> to vector<8x32xf32>
    %69 = arith.mulf %62, %49 : vector<8x32xf32>
    %70 = arith.mulf %61, %67 : vector<8x32xf32>
    %71 = arith.addf %69, %70 : vector<8x32xf32>
    %72 = math.tanh %71 : vector<8x32xf32>
    %73 = arith.mulf %68, %72 : vector<8x32xf32>
    %c16 = arith.constant 16 : index
    %c0_20 = arith.constant 0 : index
    %74 = vector.load %arg4[%c16, %c0_20] : memref<64x32xf32, #tpu.memory_space<vmem>>, vector<8x32xf32>
    tpu.vector_store %arg4[%c16, %c0_20], %73 {strides = array<i32>} : memref<64x32xf32, #tpu.memory_space<vmem>>, vector<8x32xf32>,
    %75 = vector.extract_strided_slice %6 {offsets = [24, 0], sizes = [8, 128], strides = [1, 1]} : vector<64x128xf32> to vector<8x128xf32>
    %cst_21 = arith.constant dense<0.000000e+00> : vector<8x128xf32>
    %76 = tpu.matmul %73, %2, %cst_21 {dimension_numbers = #tpu.dot_dimension_numbers<[1], [0], [0], [1], [0, 0, 1, 1], [], []>} : vector<8x32xf32>, vector<32x128xf32>, vector<8x128xf32> -> vector<8x128xf32>
    %77 = arith.addf %75, %76 : vector<8x128xf32>
    %78 = arith.negf %77 : vector<8x128xf32>
    %79 = math.exp %78 : vector<8x128xf32>
    %cst_22 = arith.constant 1.000000e+00 : f32
    %80 = vector.broadcast %cst_22 : f32 to vector<8x128xf32>
    %81 = arith.addf %80, %79 : vector<8x128xf32>
    %82 = arith.divf %80, %81 : vector<8x128xf32>
    %83 = vector.extract_strided_slice %82 {offsets = [0, 0], sizes = [8, 32], strides = [1, 1]} : vector<8x128xf32> to vector<8x32xf32>
    %84 = vector.extract_strided_slice %82 {offsets = [0, 32], sizes = [8, 32], strides = [1, 1]} : vector<8x128xf32> to vector<8x32xf32>
    %85 = vector.extract_strided_slice %82 {offsets = [0, 64], sizes = [8, 32], strides = [1, 1]} : vector<8x128xf32> to vector<8x32xf32>
    %cst_23 = arith.constant 2.000000e+00 : f32
    %86 = vector.broadcast %cst_23 : f32 to vector<8x32xf32>
    %87 = arith.mulf %86, %85 : vector<8x32xf32>
    %cst_24 = arith.constant 1.000000e+00 : f32
    %88 = vector.broadcast %cst_24 : f32 to vector<8x32xf32>
    %89 = arith.subf %87, %88 : vector<8x32xf32>
    %90 = vector.extract_strided_slice %82 {offsets = [0, 96], sizes = [8, 32], strides = [1, 1]} : vector<8x128xf32> to vector<8x32xf32>
    %91 = arith.mulf %84, %71 : vector<8x32xf32>
    %92 = arith.mulf %83, %89 : vector<8x32xf32>
    %93 = arith.addf %91, %92 : vector<8x32xf32>
    %94 = math.tanh %93 : vector<8x32xf32>
    %95 = arith.mulf %90, %94 : vector<8x32xf32>
    %c24 = arith.constant 24 : index
    %c0_25 = arith.constant 0 : index
    %96 = vector.load %arg4[%c24, %c0_25] : memref<64x32xf32, #tpu.memory_space<vmem>>, vector<8x32xf32>
    tpu.vector_store %arg4[%c24, %c0_25], %95 {strides = array<i32>} : memref<64x32xf32, #tpu.memory_space<vmem>>, vector<8x32xf32>,
    %97 = vector.extract_strided_slice %6 {offsets = [32, 0], sizes = [8, 128], strides = [1, 1]} : vector<64x128xf32> to vector<8x128xf32>
    %cst_26 = arith.constant dense<0.000000e+00> : vector<8x128xf32>
    %98 = tpu.matmul %95, %2, %cst_26 {dimension_numbers = #tpu.dot_dimension_numbers<[1], [0], [0], [1], [0, 0, 1, 1], [], []>} : vector<8x32xf32>, vector<32x128xf32>, vector<8x128xf32> -> vector<8x128xf32>
    %99 = arith.addf %97, %98 : vector<8x128xf32>
    %100 = arith.negf %99 : vector<8x128xf32>
    %101 = math.exp %100 : vector<8x128xf32>
    %cst_27 = arith.constant 1.000000e+00 : f32
    %102 = vector.broadcast %cst_27 : f32 to vector<8x128xf32>
    %103 = arith.addf %102, %101 : vector<8x128xf32>
    %104 = arith.divf %102, %103 : vector<8x128xf32>
    %105 = vector.extract_strided_slice %104 {offsets = [0, 0], sizes = [8, 32], strides = [1, 1]} : vector<8x128xf32> to vector<8x32xf32>
    %106 = vector.extract_strided_slice %104 {offsets = [0, 32], sizes = [8, 32], strides = [1, 1]} : vector<8x128xf32> to vector<8x32xf32>
    %107 = vector.extract_strided_slice %104 {offsets = [0, 64], sizes = [8, 32], strides = [1, 1]} : vector<8x128xf32> to vector<8x32xf32>
    %cst_28 = arith.constant 2.000000e+00 : f32
    %108 = vector.broadcast %cst_28 : f32 to vector<8x32xf32>
    %109 = arith.mulf %108, %107 : vector<8x32xf32>
    %cst_29 = arith.constant 1.000000e+00 : f32
    %110 = vector.broadcast %cst_29 : f32 to vector<8x32xf32>
    %111 = arith.subf %109, %110 : vector<8x32xf32>
    %112 = vector.extract_strided_slice %104 {offsets = [0, 96], sizes = [8, 32], strides = [1, 1]} : vector<8x128xf32> to vector<8x32xf32>
    %113 = arith.mulf %106, %93 : vector<8x32xf32>
    %114 = arith.mulf %105, %111 : vector<8x32xf32>
    %115 = arith.addf %113, %114 : vector<8x32xf32>
    %116 = math.tanh %115 : vector<8x32xf32>
    %117 = arith.mulf %112, %116 : vector<8x32xf32>
    %c32 = arith.constant 32 : index
    %c0_30 = arith.constant 0 : index
    %118 = vector.load %arg4[%c32, %c0_30] : memref<64x32xf32, #tpu.memory_space<vmem>>, vector<8x32xf32>
    tpu.vector_store %arg4[%c32, %c0_30], %117 {strides = array<i32>} : memref<64x32xf32, #tpu.memory_space<vmem>>, vector<8x32xf32>,
    %119 = vector.extract_strided_slice %6 {offsets = [40, 0], sizes = [8, 128], strides = [1, 1]} : vector<64x128xf32> to vector<8x128xf32>
    %cst_31 = arith.constant dense<0.000000e+00> : vector<8x128xf32>
    %120 = tpu.matmul %117, %2, %cst_31 {dimension_numbers = #tpu.dot_dimension_numbers<[1], [0], [0], [1], [0, 0, 1, 1], [], []>} : vector<8x32xf32>, vector<32x128xf32>, vector<8x128xf32> -> vector<8x128xf32>
    %121 = arith.addf %119, %120 : vector<8x128xf32>
    %122 = arith.negf %121 : vector<8x128xf32>
    %123 = math.exp %122 : vector<8x128xf32>
    %cst_32 = arith.constant 1.000000e+00 : f32
    %124 = vector.broadcast %cst_32 : f32 to vector<8x128xf32>
    %125 = arith.addf %124, %123 : vector<8x128xf32>
    %126 = arith.divf %124, %125 : vector<8x128xf32>
    %127 = vector.extract_strided_slice %126 {offsets = [0, 0], sizes = [8, 32], strides = [1, 1]} : vector<8x128xf32> to vector<8x32xf32>
    %128 = vector.extract_strided_slice %126 {offsets = [0, 32], sizes = [8, 32], strides = [1, 1]} : vector<8x128xf32> to vector<8x32xf32>
    %129 = vector.extract_strided_slice %126 {offsets = [0, 64], sizes = [8, 32], strides = [1, 1]} : vector<8x128xf32> to vector<8x32xf32>
    %cst_33 = arith.constant 2.000000e+00 : f32
    %130 = vector.broadcast %cst_33 : f32 to vector<8x32xf32>
    %131 = arith.mulf %130, %129 : vector<8x32xf32>
    %cst_34 = arith.constant 1.000000e+00 : f32
    %132 = vector.broadcast %cst_34 : f32 to vector<8x32xf32>
    %133 = arith.subf %131, %132 : vector<8x32xf32>
    %134 = vector.extract_strided_slice %126 {offsets = [0, 96], sizes = [8, 32], strides = [1, 1]} : vector<8x128xf32> to vector<8x32xf32>
    %135 = arith.mulf %128, %115 : vector<8x32xf32>
    %136 = arith.mulf %127, %133 : vector<8x32xf32>
    %137 = arith.addf %135, %136 : vector<8x32xf32>
    %138 = math.tanh %137 : vector<8x32xf32>
    %139 = arith.mulf %134, %138 : vector<8x32xf32>
    %c40 = arith.constant 40 : index
    %c0_35 = arith.constant 0 : index
    %140 = vector.load %arg4[%c40, %c0_35] : memref<64x32xf32, #tpu.memory_space<vmem>>, vector<8x32xf32>
    tpu.vector_store %arg4[%c40, %c0_35], %139 {strides = array<i32>} : memref<64x32xf32, #tpu.memory_space<vmem>>, vector<8x32xf32>,
    %141 = vector.extract_strided_slice %6 {offsets = [48, 0], sizes = [8, 128], strides = [1, 1]} : vector<64x128xf32> to vector<8x128xf32>
    %cst_36 = arith.constant dense<0.000000e+00> : vector<8x128xf32>
    %142 = tpu.matmul %139, %2, %cst_36 {dimension_numbers = #tpu.dot_dimension_numbers<[1], [0], [0], [1], [0, 0, 1, 1], [], []>} : vector<8x32xf32>, vector<32x128xf32>, vector<8x128xf32> -> vector<8x128xf32>
    %143 = arith.addf %141, %142 : vector<8x128xf32>
    %144 = arith.negf %143 : vector<8x128xf32>
    %145 = math.exp %144 : vector<8x128xf32>
    %cst_37 = arith.constant 1.000000e+00 : f32
    %146 = vector.broadcast %cst_37 : f32 to vector<8x128xf32>
    %147 = arith.addf %146, %145 : vector<8x128xf32>
    %148 = arith.divf %146, %147 : vector<8x128xf32>
    %149 = vector.extract_strided_slice %148 {offsets = [0, 0], sizes = [8, 32], strides = [1, 1]} : vector<8x128xf32> to vector<8x32xf32>
    %150 = vector.extract_strided_slice %148 {offsets = [0, 32], sizes = [8, 32], strides = [1, 1]} : vector<8x128xf32> to vector<8x32xf32>
    %151 = vector.extract_strided_slice %148 {offsets = [0, 64], sizes = [8, 32], strides = [1, 1]} : vector<8x128xf32> to vector<8x32xf32>
    %cst_38 = arith.constant 2.000000e+00 : f32
    %152 = vector.broadcast %cst_38 : f32 to vector<8x32xf32>
    %153 = arith.mulf %152, %151 : vector<8x32xf32>
    %cst_39 = arith.constant 1.000000e+00 : f32
    %154 = vector.broadcast %cst_39 : f32 to vector<8x32xf32>
    %155 = arith.subf %153, %154 : vector<8x32xf32>
    %156 = vector.extract_strided_slice %148 {offsets = [0, 96], sizes = [8, 32], strides = [1, 1]} : vector<8x128xf32> to vector<8x32xf32>
    %157 = arith.mulf %150, %137 : vector<8x32xf32>
    %158 = arith.mulf %149, %155 : vector<8x32xf32>
    %159 = arith.addf %157, %158 : vector<8x32xf32>
    %160 = math.tanh %159 : vector<8x32xf32>
    %161 = arith.mulf %156, %160 : vector<8x32xf32>
    %c48 = arith.constant 48 : index
    %c0_40 = arith.constant 0 : index
    %162 = vector.load %arg4[%c48, %c0_40] : memref<64x32xf32, #tpu.memory_space<vmem>>, vector<8x32xf32>
    tpu.vector_store %arg4[%c48, %c0_40], %161 {strides = array<i32>} : memref<64x32xf32, #tpu.memory_space<vmem>>, vector<8x32xf32>,
    %163 = vector.extract_strided_slice %6 {offsets = [56, 0], sizes = [8, 128], strides = [1, 1]} : vector<64x128xf32> to vector<8x128xf32>
    %cst_41 = arith.constant dense<0.000000e+00> : vector<8x128xf32>
    %164 = tpu.matmul %161, %2, %cst_41 {dimension_numbers = #tpu.dot_dimension_numbers<[1], [0], [0], [1], [0, 0, 1, 1], [], []>} : vector<8x32xf32>, vector<32x128xf32>, vector<8x128xf32> -> vector<8x128xf32>
    %165 = arith.addf %163, %164 : vector<8x128xf32>
    %166 = arith.negf %165 : vector<8x128xf32>
    %167 = math.exp %166 : vector<8x128xf32>
    %cst_42 = arith.constant 1.000000e+00 : f32
    %168 = vector.broadcast %cst_42 : f32 to vector<8x128xf32>
    %169 = arith.addf %168, %167 : vector<8x128xf32>
    %170 = arith.divf %168, %169 : vector<8x128xf32>
    %171 = vector.extract_strided_slice %170 {offsets = [0, 0], sizes = [8, 32], strides = [1, 1]} : vector<8x128xf32> to vector<8x32xf32>
    %172 = vector.extract_strided_slice %170 {offsets = [0, 32], sizes = [8, 32], strides = [1, 1]} : vector<8x128xf32> to vector<8x32xf32>
    %173 = vector.extract_strided_slice %170 {offsets = [0, 64], sizes = [8, 32], strides = [1, 1]} : vector<8x128xf32> to vector<8x32xf32>
    %cst_43 = arith.constant 2.000000e+00 : f32
    %174 = vector.broadcast %cst_43 : f32 to vector<8x32xf32>
    %175 = arith.mulf %174, %173 : vector<8x32xf32>
    %cst_44 = arith.constant 1.000000e+00 : f32
    %176 = vector.broadcast %cst_44 : f32 to vector<8x32xf32>
    %177 = arith.subf %175, %176 : vector<8x32xf32>
    %178 = vector.extract_strided_slice %170 {offsets = [0, 96], sizes = [8, 32], strides = [1, 1]} : vector<8x128xf32> to vector<8x32xf32>
    %179 = arith.mulf %172, %159 : vector<8x32xf32>
    %180 = arith.mulf %171, %177 : vector<8x32xf32>
    %181 = arith.addf %179, %180 : vector<8x32xf32>
    %182 = math.tanh %181 : vector<8x32xf32>
    %183 = arith.mulf %178, %182 : vector<8x32xf32>
    %c56 = arith.constant 56 : index
    %c0_45 = arith.constant 0 : index
    %184 = vector.load %arg4[%c56, %c0_45] : memref<64x32xf32, #tpu.memory_space<vmem>>, vector<8x32xf32>
    tpu.vector_store %arg4[%c56, %c0_45], %183 {strides = array<i32>} : memref<64x32xf32, #tpu.memory_space<vmem>>, vector<8x32xf32>,
    %c0_46 = arith.constant 0 : index
    %c0_47 = arith.constant 0 : index
    %185 = vector.load %arg4[%c0_46, %c0_47] : memref<64x32xf32, #tpu.memory_space<vmem>>, vector<64x32xf32>
    %cst_48 = arith.constant dense<0.000000e+00> : vector<64x128xf32>
    %186 = tpu.matmul %185, %3, %cst_48 {dimension_numbers = #tpu.dot_dimension_numbers<[1], [0], [0], [1], [0, 0, 1, 1], [], []>} : vector<64x32xf32>, vector<32x128xf32>, vector<64x128xf32> -> vector<64x128xf32>
    %187 = vector.broadcast %4 : vector<1x128xf32> to vector<64x128xf32>
    %188 = arith.addf %186, %187 : vector<64x128xf32>
    %189 = math.tanh %188 : vector<64x128xf32>
    %c0_49 = arith.constant 0 : index
    %c0_50 = arith.constant 0 : index
    %190 = vector.load %arg3[%c0_49, %c0_50] : memref<64x128xf32, #tpu.memory_space<vmem>>, vector<64x128xf32>
    tpu.vector_store %arg3[%c0_49, %c0_50], %189 {strides = array<i32>} : memref<64x128xf32, #tpu.memory_space<vmem>>, vector<64x128xf32>,
    return
  }
  func.func @transform_0(%arg0: i32) -> (i32, i32) {
    %c0_i32 = arith.constant 0 : i32
    %c0_i32_0 = arith.constant 0 : i32
    %c0_i32_1 = arith.constant 0 : i32
    return %c0_i32, %c0_i32_0 : i32, i32
  }
  func.func @transform_1(%arg0: i32) -> (i32, i32) {
    %c0_i32 = arith.constant 0 : i32
    %c0_i32_0 = arith.constant 0 : i32
    %c0_i32_1 = arith.constant 0 : i32
    return %c0_i32, %c0_i32_0 : i32, i32
  }
  func.func @transform_2(%arg0: i32) -> (i32, i32) {
    %c0_i32 = arith.constant 0 : i32
    %c0_i32_0 = arith.constant 0 : i32
    %c0_i32_1 = arith.constant 0 : i32
    return %c0_i32, %c0_i32_0 : i32, i32
  }
}

</mosaic_0001>

<bundles_post_ra>
// kernel: eniac_generator_forward.1
= control target key start
LH: loop header
LB: loop body
LE: loop exit
PB: predicated region body
PF: predicated region fallthrough
CT: control target
= control target key end

     0   :  { %vm31_vm0 = vcmask 195584   ;;  %v1450_v7 = vmov 0.0   ;;  %vm1451_vm1 = vmmov 0   ;;  %s1452_s7 = smov 64   ;;  %s1453_s8 = smov 32   ;;  %vm161_vm2 = vcmask 261120   ;;  %s1731_s1 = inlined_call_operand.vmem [shape: f32[96,128], index: 1, kind: input, shape index: {}]   ;;  %s1732_s0 = inlined_call_operand.vmem [shape: f32[64,24], index: 0, kind: input, shape index: {}]   ;;  %s1733_s2 = inlined_call_operand.vmem [shape: f32[64,128], index: 2, kind: output, shape index: {}]  }
   0x1   :  { %v13_v0 = vld [vmem:[%s1731_s1 + $0x10] sm:$0xff]  ;;  %v12_v1 = vld [vmem:[%s1731_s1 + $0x8] sm:$0xff]  ;;  %v27_v2 = vld [vmem:[%s1732_s0 + $0x20] sm:$0xff] }
   0x2   :  { %1376 = vmatprep.subr.mxu1 %v13_v0  ;;  %1250 = vmatprep.subr.mxu0 %v13_v0  ;;  %v11_v3 = vld [vmem:[%s1731_s1] sm:$0xff]  ;;  %v28_v4 = vld [vmem:[%s1732_s0 + $0x28] sm:$0xff]  ;;  %v1488_v5 = vld [vmem:[%s1731_s1 + $0x30] sm:$0xff] }
   0x3   :  { %1379 = vmatpush3.msra.mxu1 %v13_v0  ;;  %1262 = vmatprep.mubr.msk.f32.mxu1 %vm31_vm0, %v27_v2  ;;  %v29_v6 = vld [vmem:[%s1732_s0 + $0x30] sm:$0xff]  ;;  %v1498_v8 = vld [vmem:[%s1731_s1 + $0x28] sm:$0xff]  ;;  %v23_v9 = vld [vmem:[%s1732_s0] sm:$0xff] }
   0x4   :  { %1377 = vmatprep.subr.mxu1 %v12_v1  ;;  %1251 = vmatpush3.msra.mxu0 %v13_v0  ;;  %v30_v10 = vld [vmem:[%s1732_s0 + $0x38] sm:$0xff]  ;;  %v24_v11 = vld [vmem:[%s1732_s0 + $0x8] sm:$0xff]  ;;  %v1515_v12 = vld [vmem:[%s1731_s1 + $0x20] sm:$0xff] }
   0x5   :  { %1380 = vmatpush3.msra.mxu1 %v12_v1  ;;  %1252 = vmatprep.subr.mxu0 %v12_v1  ;;  %v1524_v13 = vld [vmem:[%s1731_s1 + $0x18] sm:$0xff]  ;;  %v25_v52 = vld [vmem:[%s1732_s0 + $0x10] sm:$0xff] }
   0x6   :  { %1378 = vmatprep.subr.mxu1 %v11_v3  ;;  %1253 = vmatpush3.msra.mxu0 %v12_v1  ;;  %v26_v53 = vld [vmem:[%s1732_s0 + $0x18] sm:$0xff] }
   0x7   :  { %1381 = vmatpush3.msra.mxu1 %v11_v3  ;;  %1254 = vmatprep.subr.mxu0 %v11_v3 }
   0x8   :  { %1263 = vmatmul.mubr.msk.f32.vlgmr.msra.gmra.mxu1 %vm31_vm0, %v28_v4  ;;  %1268 = vmatprep.subr.mxu1 %v1450_v7 }
   0x9   :  { %1269 = vmatpush3.msra.mxu1 %v1488_v5  ;;  %1265 = vmatprep.mubr.msk.f32.mxu1 %vm31_vm0, %v29_v6 }
   0xa   :  { %1270 = vmatprep.subr.mxu1 %v1450_v7  ;;  %1255 = vmatpush3.msra.mxu0 %v11_v3 }
   0xb   :  { %1271 = vmatpush3.msra.mxu1 %v1498_v8  ;;  %1256 = vmatprep.mubr.msk.f32.mxu0 %vm31_vm0, %v23_v9 }
   0xc   :  { %1266 = vmatmul.mubr.msk.f32.gmra.mxu1 %vm31_vm0, %v30_v10  ;;  %1272 = vmatprep.subr.mxu1 %v1450_v7 }
   0xd   :  { %1257 = vmatmul.mubr.msk.f32.vlgmr.msra.gmra.mxu0 %vm31_vm0, %v24_v11  ;;  %1273 = vmatpush3.msra.mxu1 %v1515_v12 }
   0xe   :  { %1274 = vmatprep.subr.mxu1 %v1450_v7  ;;  %1276 = vmatprep.mubr.msk.f32.mxu1 %vm1451_vm1, %v1450_v7 }
   0xf   :  { %1275 = vmatpush3.msra.mxu1 %v1524_v13  ;;  %1290 = vmatprep.subr.mxu0 %v1450_v7 }
  0x10   :  { %1277 = vmatmul.mubr.f32.vlgmr.msra.gmra.mxu1 %v1450_v7  ;;  %1279 = vmatprep.subr.mxu1 %v1450_v7 }
  0x11   :  { %1280 = vmatpush3.msra.mxu1 %v1488_v5  ;;  %1287 = vmatprep.mubr.msk.f32.mxu1 %vm1451_vm1, %v1450_v7 }
  0x12   :  { %1281 = vmatprep.subr.mxu1 %v1450_v7  ;;  %1291 = vmatpush3.msra.mxu0 %v1488_v5 }
  0x13   :  { %1282 = vmatpush3.msra.mxu1 %v1498_v8  ;;  %1292 = vmatprep.subr.mxu0 %v1450_v7 }
  0x14   :  { %1283 = vmatprep.subr.mxu1 %v1450_v7  ;;  %1293 = vmatpush3.msra.mxu0 %v1498_v8 }
  0x15   :  { %1284 = vmatpush3.msra.mxu1 %v1515_v12  ;;  %1294 = vmatprep.subr.mxu0 %v1450_v7 }
  0x16   :  { %1285 = vmatprep.subr.mxu1 %v1450_v7  ;;  %1295 = vmatpush3.msra.mxu0 %v1515_v12 }
  0x17   :  { %1286 = vmatpush3.msra.mxu1 %v1524_v13  ;;  %1296 = vmatprep.subr.mxu0 %v1450_v7 }
  0x18   :  { %1297 = vmatpush3.msra.mxu0 %v1524_v13  ;;  %1301 = vmatprep.subr.mxu1 %v1450_v7 }
  0x19   :  { %1312 = vmatprep.subr.mxu0 %v1450_v7  ;;  %1259 = vmatprep.mubr.msk.f32.mxu0 %vm31_vm0, %v25_v52 }
  0x1a   :  { %1260 = vmatmul.mubr.msk.f32.gmra.mxu0 %vm31_vm0, %v26_v53 }
  0x1b   :  { %1298 = vmatprep.mubr.msk.f32.mxu0 %vm1451_vm1, %v1450_v7 }
  0xc8   :  { %v1553_v14 = vpop.f32.mrf.mxu1 }
  0xca   :  { %v1555_v15 = vpop.f32.mrf.mxu1 }
  0xcc   :  { %v1557_v16 = vpop.f32.mrf.mxu1 }
  0xcd   :  { %v1258_v17 = vpop.f32.mrf.mxu0 }
  0xce   :  { %v1559_v18 = vpop.f32.mrf.mxu1 }
  0xcf   :  { %v122_v19 = vpop.f32.mrf.mxu0 }
  0xd0   :  { %v231_v20 = vpop.f32.mrf.mxu1 }
  0xd1   :  { %v235_v21 = vadd.f32 %v231_v20, %v122_v19 }
  0xd2   :  { %v1278_v22 = vpop.f32.mrf.mxu1 }
  0xd3   :  { %v1156_v23 = vmul.f32 -1.442695, %v235_v21 }
  0xd5   :  { %1386 = vpow2.f32 %v1156_v23 }
  0xda   :  { %v1261_v58 = vpop.f32.mrf.mxu0 }
  0xdc   :  { %v132_v59 = vpop.f32.mrf.mxu0 }
  0xe2   :  { %v1387_v24 = vpop.eup %1386 }
  0xe3   :  { %v239_v25 = vadd.f32 1.0, %v1387_v24 }
  0xe5   :  { %1388 = vrcp.f32 %v239_v25 }
  0xf2   :  { %v1389_v26 = vpop.eup %1388 }
  0xf3   :  { %v242_v27 = vmul.f32 2.0, %v1389_v26  ;;  %v244_v31 = vmul.f32 0.0, %v1389_v26 }
  0xf5   :  { %v1157_v28 = vadd.f32 -1.0, %v242_v27 }
  0xf7   :  { %246 = vrot.lane.b32.xlu0 %v1157_v28, %s1452_s7 }
 0x169   :  { %v247_v29 = vpop.permute.xlu0 %246 }
 0x16a   :  { %v249_v30 = vmul.f32 %v1389_v26, %v247_v29 }
 0x16c   :  { %251 = vrot.lane.b32.xlu0 %v249_v30, %s1453_s8 }
 0x1de   :  { %v252_v32 = vpop.permute.xlu0 %251 }
 0x1df   :  { %v254_v33 = vadd.f32 %v252_v32, %v244_v31 }
 0x1e1   :  { %1390 = vtanh.f32 %v254_v33 }
 0x1ee   :  { %v1391_v34 = vpop.eup %1390 }
 0x1ef   :  { %257 = vrot.lane.b32.xlu1 %v1391_v34, %s1452_s7 }
 0x261   :  { %v258_v35 = vpop.permute.xlu1 %257 }
 0x262   :  { %v260_v36 = vmul.f32 %v1389_v26, %v258_v35 }
 0x264   :  { %262 = vrot.lane.b32.xlu1 %v260_v36, %s1453_s8 }
 0x2d6   :  { %v263_v37 = vpop.permute.xlu1 %262 }
 0x2d7   :  { %265 = vst.msk [vmem:[#allocation2] sm:$0xff] %vm161_vm2, %v263_v37  ;;  %1288 = vmatmul.mubr.msk.f32.vlgmr.msra.gmra.mxu1 %vm161_vm2, %v263_v37 }
 0x2d8   :  { %1302 = vmatpush3.msra.mxu1 %v1488_v5  ;;  %1309 = vmatprep.mubr.msk.f32.mxu1 %vm1451_vm1, %v1450_v7 }
 0x2d9   :  { %1303 = vmatprep.subr.mxu1 %v1450_v7 }
 0x2da   :  { %1304 = vmatpush3.msra.mxu1 %v1498_v8 }
 0x2db   :  { %1305 = vmatprep.subr.mxu1 %v1450_v7 }
 0x2dc   :  { %1306 = vmatpush3.msra.mxu1 %v1515_v12 }
 0x2dd   :  { %1307 = vmatprep.subr.mxu1 %v1450_v7 }
 0x2de   :  { %1308 = vmatpush3.msra.mxu1 %v1524_v13 }
 0x2df   :  { %1323 = vmatprep.subr.mxu1 %v1450_v7 }
 0x397   :  { %v334_v38 = vpop.f32.mrf.mxu1 }
 0x398   :  { %v338_v39 = vadd.f32 %v1258_v17, %v334_v38 }
 0x399   :  { %v1289_v40 = vpop.f32.mrf.mxu1 }
 0x39a   :  { %v1159_v41 = vmul.f32 -1.442695, %v338_v39 }
 0x39c   :  { %1392 = vpow2.f32 %v1159_v41 }
 0x3a9   :  { %v1393_v42 = vpop.eup %1392 }
 0x3aa   :  { %v342_v43 = vadd.f32 1.0, %v1393_v42 }
 0x3ac   :  { %1394 = vrcp.f32 %v342_v43 }
 0x3b9   :  { %v1395_v44 = vpop.eup %1394 }
 0x3ba   :  { %v345_v45 = vmul.f32 2.0, %v1395_v44  ;;  %v347_v49 = vmul.f32 %v1395_v44, %v254_v33 }
 0x3bc   :  { %v1160_v46 = vadd.f32 -1.0, %v345_v45 }
 0x3be   :  { %349 = vrot.lane.b32.xlu0 %v1160_v46, %s1452_s7 }
 0x430   :  { %v350_v47 = vpop.permute.xlu0 %349 }
 0x431   :  { %v352_v48 = vmul.f32 %v1395_v44, %v350_v47 }
 0x433   :  { %354 = vrot.lane.b32.xlu1 %v352_v48, %s1453_s8 }
 0x4a5   :  { %v355_v50 = vpop.permute.xlu1 %354 }
 0x4a6   :  { %v357_v51 = vadd.f32 %v355_v50, %v347_v49 }
 0x4a8   :  { %1396 = vtanh.f32 %v357_v51 }
 0x4b5   :  { %v1397_v54 = vpop.eup %1396 }
 0x4b6   :  { %360 = vrot.lane.b32.xlu0 %v1397_v54, %s1452_s7 }
 0x528   :  { %v361_v55 = vpop.permute.xlu0 %360 }
 0x529   :  { %v363_v56 = vmul.f32 %v1395_v44, %v361_v55 }
 0x52b   :  { %365 = vrot.lane.b32.xlu1 %v363_v56, %s1453_s8 }
 0x59d   :  { %v366_v57 = vpop.permute.xlu1 %365 }
 0x59e   :  { %368 = vst.msk [vmem:[#allocation2 + $0x8] sm:$0xff] %vm161_vm2, %v366_v57  ;;  %1299 = vmatmul.mubr.msk.f32.vlgmr.msra.gmra.mxu0 %vm161_vm2, %v366_v57 }
 0x59f   :  { %1313 = vmatpush3.msra.mxu0 %v1488_v5  ;;  %1320 = vmatprep.mubr.msk.f32.mxu0 %vm1451_vm1, %v1450_v7 }
 0x5a0   :  { %1314 = vmatprep.subr.mxu0 %v1450_v7 }
 0x5a1   :  { %1315 = vmatpush3.msra.mxu0 %v1498_v8 }
 0x5a2   :  { %1316 = vmatprep.subr.mxu0 %v1450_v7 }
 0x5a3   :  { %1317 = vmatpush3.msra.mxu0 %v1515_v12 }
 0x5a4   :  { %1318 = vmatprep.subr.mxu0 %v1450_v7 }
 0x5a5   :  { %1319 = vmatpush3.msra.mxu0 %v1524_v13 }
 0x5a6   :  { %1334 = vmatprep.subr.mxu0 %v1450_v7 }
 0x65e   :  { %v437_v60 = vpop.f32.mrf.mxu0 }
 0x65f   :  { %v441_v61 = vadd.f32 %v437_v60, %v132_v59 }
 0x660   :  { %v1300_v62 = vpop.f32.mrf.mxu0 }
 0x661   :  { %v1162_v63 = vmul.f32 -1.442695, %v441_v61 }
 0x663   :  { %1398 = vpow2.f32 %v1162_v63 }
 0x670   :  { %v1399_v0 = vpop.eup %1398 }
 0x671   :  { %v445_v1 = vadd.f32 1.0, %v1399_v0 }
 0x673   :  { %1400 = vrcp.f32 %v445_v1 }
 0x680   :  { %v1401_v2 = vpop.eup %1400 }
 0x681   :  { %v448_v3 = vmul.f32 2.0, %v1401_v2  ;;  %v450_v10 = vmul.f32 %v1401_v2, %v357_v51 }
 0x683   :  { %v1163_v4 = vadd.f32 -1.0, %v448_v3 }
 0x685   :  { %452 = vrot.lane.b32.xlu0 %v1163_v4, %s1452_s7 }
 0x6f7   :  { %v453_v6 = vpop.permute.xlu0 %452 }
 0x6f8   :  { %v455_v9 = vmul.f32 %v1401_v2, %v453_v6 }
 0x6fa   :  { %457 = vrot.lane.b32.xlu1 %v455_v9, %s1453_s8 }
 0x76c   :  { %v458_v11 = vpop.permute.xlu1 %457 }
 0x76d   :  { %v460_v17 = vadd.f32 %v458_v11, %v450_v10  ;;  %v20_v10 = vld [vmem:[%s1731_s1 + $0x48] sm:$0xff]  ;;  %v987_v11 = vld [vmem:[#allocation2] sm:$0xff] }
 0x76f   :  { %1402 = vtanh.f32 %v460_v17 }
 0x77c   :  { %v1403_v19 = vpop.eup %1402 }
 0x77d   :  { %463 = vrot.lane.b32.xlu0 %v1403_v19, %s1452_s7  ;;  %v18_v19 = vld [vmem:[%s1731_s1 + $0x38] sm:$0xff] }
 0x7ef   :  { %v464_v20 = vpop.permute.xlu0 %463 }
 0x7f0   :  { %v466_v21 = vmul.f32 %v1401_v2, %v464_v20  ;;  %v988_v20 = vld [vmem:[#allocation2 + $0x8] sm:$0xff] }
 0x7f2   :  { %468 = vrot.lane.b32.xlu1 %v466_v21, %s1453_s8 }
 0x864   :  { %v469_v22 = vpop.permute.xlu1 %468 }
 0x865   :  { %471 = vst.msk [vmem:[#allocation2 + $0x10] sm:$0xff] %vm161_vm2, %v469_v22  ;;  %1310 = vmatmul.mubr.msk.f32.vlgmr.msra.gmra.mxu1 %vm161_vm2, %v469_v22 }
 0x866   :  { %1324 = vmatpush3.msra.mxu1 %v1488_v5  ;;  %1331 = vmatprep.mubr.msk.f32.mxu1 %vm1451_vm1, %v1450_v7 }
 0x867   :  { %1325 = vmatprep.subr.mxu1 %v1450_v7 }
 0x868   :  { %1326 = vmatpush3.msra.mxu1 %v1498_v8 }
 0x869   :  { %1327 = vmatprep.subr.mxu1 %v1450_v7 }
 0x86a   :  { %1328 = vmatpush3.msra.mxu1 %v1515_v12 }
 0x86b   :  { %1329 = vmatprep.subr.mxu1 %v1450_v7 }
 0x86c   :  { %1330 = vmatpush3.msra.mxu1 %v1524_v13  ;;  %v989_v21 = vld [vmem:[#allocation2 + $0x10] sm:$0xff] }
 0x86d   :  { %1345 = vmatprep.subr.mxu1 %v1450_v7 }
 0x925   :  { %v540_v23 = vpop.f32.mrf.mxu1 }
 0x926   :  { %v544_v24 = vadd.f32 %v1261_v58, %v540_v23 }
 0x927   :  { %v1311_v25 = vpop.f32.mrf.mxu1 }
 0x928   :  { %v1165_v26 = vmul.f32 -1.442695, %v544_v24  ;;  %v995_v25 = vlaneseq }
 0x92a   :  { %1404 = vpow2.f32 %v1165_v26  ;;  %v996_v26 = vshrl.u32 %v995_v25, 7 }
 0x937   :  { %v1405_v27 = vpop.eup %1404 }
 0x938   :  { %v548_v28 = vadd.f32 1.0, %v1405_v27 }
 0x93a   :  { %1406 = vrcp.f32 %v548_v28 }
 0x947   :  { %v1407_v29 = vpop.eup %1406 }
 0x948   :  { %v551_v30 = vmul.f32 2.0, %v1407_v29  ;;  %v553_v34 = vmul.f32 %v1407_v29, %v460_v17  ;;  %v19_v17 = vld [vmem:[%s1731_s1 + $0x40] sm:$0xff] }
 0x94a   :  { %v1166_v31 = vadd.f32 -1.0, %v551_v30 }
 0x94c   :  { %555 = vrot.lane.b32.xlu0 %v1166_v31, %s1452_s7  ;;  %v22_v31 = vld [vmem:[%s1731_s1 + $0x58] sm:$0xff] }
 0x9be   :  { %v556_v32 = vpop.permute.xlu0 %555 }
 0x9bf   :  { %v558_v33 = vmul.f32 %v1407_v29, %v556_v32 }
 0x9c1   :  { %560 = vrot.lane.b32.xlu1 %v558_v33, %s1453_s8 }
 0xa33   :  { %v561_v35 = vpop.permute.xlu1 %560 }
 0xa34   :  { %v563_v36 = vadd.f32 %v561_v35, %v553_v34 }
 0xa36   :  { %1408 = vtanh.f32 %v563_v36 }
 0xa43   :  { %v1409_v37 = vpop.eup %1408 }
 0xa44   :  { %566 = vrot.lane.b32.xlu0 %v1409_v37, %s1452_s7 }
 0xab6   :  { %v567_v38 = vpop.permute.xlu0 %566 }
 0xab7   :  { %v569_v39 = vmul.f32 %v1407_v29, %v567_v38  ;;  %v997_v29 = vsub.s32 0, %v996_v26 }
 0xab9   :  { %571 = vrot.lane.b32.xlu1 %v569_v39, %s1453_s8  ;;  %v1682_v33 = vrot.slane %v22_v31, %v997_v29 }
 0xb2b   :  { %v572_v40 = vpop.permute.xlu1 %571 }
 0xb2c   :  { %574 = vst.msk [vmem:[#allocation2 + $0x18] sm:$0xff] %vm161_vm2, %v572_v40  ;;  %1321 = vmatmul.mubr.msk.f32.vlgmr.msra.gmra.mxu0 %vm161_vm2, %v572_v40 }
 0xb2d   :  { %1335 = vmatpush3.msra.mxu0 %v1488_v5  ;;  %1342 = vmatprep.mubr.msk.f32.mxu0 %vm1451_vm1, %v1450_v7 }
 0xb2e   :  { %1336 = vmatprep.subr.mxu0 %v1450_v7 }
 0xb2f   :  { %1337 = vmatpush3.msra.mxu0 %v1498_v8 }
 0xb30   :  { %1338 = vmatprep.subr.mxu0 %v1450_v7 }
 0xb31   :  { %1339 = vmatpush3.msra.mxu0 %v1515_v12 }
 0xb32   :  { %1340 = vmatprep.subr.mxu0 %v1450_v7 }
 0xb33   :  { %1341 = vmatpush3.msra.mxu0 %v1524_v13  ;;  %v990_v22 = vld [vmem:[#allocation2 + $0x18] sm:$0xff] }
 0xbec   :  { %v643_v41 = vpop.f32.mrf.mxu0 }
 0xbed   :  { %v647_v42 = vadd.f32 %v643_v41, %v1555_v15 }
 0xbee   :  { %v1322_v43 = vpop.f32.mrf.mxu0 }
 0xbef   :  { %v1168_v44 = vmul.f32 -1.442695, %v647_v42 }
 0xbf1   :  { %1410 = vpow2.f32 %v1168_v44 }
 0xbfe   :  { %v1411_v45 = vpop.eup %1410 }
 0xbff   :  { %v651_v46 = vadd.f32 1.0, %v1411_v45 }
 0xc01   :  { %1412 = vrcp.f32 %v651_v46 }
 0xc0e   :  { %v1413_v47 = vpop.eup %1412 }
 0xc0f   :  { %v654_v48 = vmul.f32 2.0, %v1413_v47  ;;  %v656_v52 = vmul.f32 %v1413_v47, %v563_v36 }
 0xc11   :  { %v1169_v49 = vadd.f32 -1.0, %v654_v48 }
 0xc13   :  { %658 = vrot.lane.b32.xlu0 %v1169_v49, %s1452_s7 }
 0xc85   :  { %v659_v50 = vpop.permute.xlu0 %658 }
 0xc86   :  { %v661_v51 = vmul.f32 %v1413_v47, %v659_v50 }
 0xc88   :  { %663 = vrot.lane.b32.xlu1 %v661_v51, %s1453_s8 }
 0xcfa   :  { %v664_v53 = vpop.permute.xlu1 %663 }
 0xcfb   :  { %v666_v54 = vadd.f32 %v664_v53, %v656_v52 }
 0xcfd   :  { %1414 = vtanh.f32 %v666_v54 }
 0xd0a   :  { %v1415_v15 = vpop.eup %1414 }
 0xd0b   :  { %669 = vrot.lane.b32.xlu0 %v1415_v15, %s1452_s7 }
 0xd7d   :  { %v670_v55 = vpop.permute.xlu0 %669 }
 0xd7e   :  { %v672_v56 = vmul.f32 %v1413_v47, %v670_v55 }
 0xd80   :  { %674 = vrot.lane.b32.xlu1 %v672_v56, %s1453_s8 }
 0xdf2   :  { %v675_v57 = vpop.permute.xlu1 %674 }
 0xdf3   :  { %677 = vst.msk [vmem:[#allocation2 + $0x20] sm:$0xff] %vm161_vm2, %v675_v57  ;;  %1332 = vmatmul.mubr.msk.f32.vlgmr.msra.gmra.mxu1 %vm161_vm2, %v675_v57 }
 0xdf4   :  { %1346 = vmatpush3.msra.mxu1 %v1488_v5  ;;  %1353 = vmatprep.mubr.msk.f32.mxu1 %vm1451_vm1, %v1450_v7 }
 0xdf5   :  { %1347 = vmatprep.subr.mxu1 %v1450_v7 }
 0xdf6   :  { %1348 = vmatpush3.msra.mxu1 %v1498_v8 }
 0xdf7   :  { %1349 = vmatprep.subr.mxu1 %v1450_v7 }
 0xdf8   :  { %1350 = vmatpush3.msra.mxu1 %v1515_v12 }
 0xdf9   :  { %1351 = vmatprep.subr.mxu1 %v1450_v7 }
 0xdfa   :  { %1352 = vmatpush3.msra.mxu1 %v1524_v13  ;;  %v991_v23 = vld [vmem:[#allocation2 + $0x20] sm:$0xff] }
 0xeb3   :  { %v746_v58 = vpop.f32.mrf.mxu1 }
 0xeb4   :  { %v750_v59 = vadd.f32 %v1553_v14, %v746_v58  ;;  %v21_v14 = vld [vmem:[%s1731_s1 + $0x50] sm:$0xff] }
 0xeb5   :  { %v1333_v60 = vpop.f32.mrf.mxu1  ;;  %1356 = vmatprep.subr.mxu0 %v21_v14 }
 0xeb6   :  { %v1171_v5 = vmul.f32 -1.442695, %v750_v59 }
 0xeb8   :  { %1416 = vpow2.f32 %v1171_v5 }
 0xec5   :  { %v1417_v61 = vpop.eup %1416 }
 0xec6   :  { %v754_v62 = vadd.f32 1.0, %v1417_v61 }
 0xec8   :  { %1418 = vrcp.f32 %v754_v62 }
 0xed5   :  { %v1419_v63 = vpop.eup %1418 }
 0xed6   :  { %v757_v0 = vmul.f32 2.0, %v1419_v63  ;;  %v759_v7 = vmul.f32 %v1419_v63, %v666_v54 }
 0xed8   :  { %v1172_v8 = vadd.f32 -1.0, %v757_v0 }
 0xeda   :  { %761 = vrot.lane.b32.xlu0 %v1172_v8, %s1452_s7 }
 0xf4c   :  { %v762_v1 = vpop.permute.xlu0 %761 }
 0xf4d   :  { %v764_v12 = vmul.f32 %v1419_v63, %v762_v1 }
 0xf4f   :  { %766 = vrot.lane.b32.xlu1 %v764_v12, %s1453_s8 }
 0xfc1   :  { %v767_v13 = vpop.permute.xlu1 %766 }
 0xfc2   :  { %v1653_v2 = vadd.f32 %v767_v13, %v759_v7 }
 0xfc4   :  { %1420 = vtanh.f32 %v1653_v2 }
 0xfd1   :  { %v1421_v3 = vpop.eup %1420 }
 0xfd2   :  { %772 = vrot.lane.b32.xlu0 %v1421_v3, %s1452_s7 }
0x1044   :  { %v773_v4 = vpop.permute.xlu0 %772 }
0x1045   :  { %v775_v6 = vmul.f32 %v1419_v63, %v773_v4 }
0x1047   :  { %777 = vrot.lane.b32.xlu1 %v775_v6, %s1453_s8 }
0x10b9   :  { %v778_v9 = vpop.permute.xlu1 %777 }
0x10ba   :  { %780 = vst.msk [vmem:[#allocation2 + $0x28] sm:$0xff] %vm161_vm2, %v778_v9  ;;  %1343 = vmatmul.mubr.msk.f32.vlgmr.msra.gmra.mxu0 %vm161_vm2, %v778_v9 }
0x10bb   :  { %1357 = vmatpush3.msra.mxu0 %v21_v14  ;;  %1364 = vmatprep.mubr.msk.f32.mxu0 %vm161_vm2, %v987_v11 }
0x10bc   :  { %1358 = vmatprep.subr.mxu0 %v20_v10 }
0x10bd   :  { %1359 = vmatpush3.msra.mxu0 %v20_v10 }
0x10be   :  { %1360 = vmatprep.subr.mxu0 %v19_v17 }
0x10bf   :  { %1361 = vmatpush3.msra.mxu0 %v19_v17 }
0x10c0   :  { %1362 = vmatprep.subr.mxu0 %v18_v19 }
0x10c1   :  { %1363 = vmatpush3.msra.mxu0 %v18_v19  ;;  %v992_v24 = vld [vmem:[#allocation2 + $0x28] sm:$0xff] }
0x10c2   :  { %1365 = vmatmul.mubr.msk.f32.vlgmr.msra.gmra.mxu0 %vm161_vm2, %v988_v20 }
0x10c3   :  { %1367 = vmatprep.mubr.msk.f32.mxu0 %vm161_vm2, %v989_v21 }
0x10c6   :  { %1368 = vmatmul.mubr.msk.f32.gmra.mxu0 %vm161_vm2, %v990_v22 }
0x10c7   :  { %1370 = vmatprep.mubr.msk.f32.mxu0 %vm161_vm2, %v991_v23 }
0x10ca   :  { %1371 = vmatmul.mubr.msk.f32.gmra.mxu0 %vm161_vm2, %v992_v24 }
0x117a   :  { %v849_v27 = vpop.f32.mrf.mxu0 }
0x117b   :  { %v853_v28 = vadd.f32 %v849_v27, %v1559_v18 }
0x117c   :  { %v1344_v30 = vpop.f32.mrf.mxu0 }
0x117d   :  { %v1174_v32 = vmul.f32 -1.442695, %v853_v28 }
0x117f   :  { %1422 = vpow2.f32 %v1174_v32 }
0x1182   :  { %v1366_v34 = vpop.f32.mrf.mxu0 }
0x1183   :  { %v1095_v35 = vadd.f32 %v1366_v34, %v1682_v33 }
0x1184   :  { %v1089_v36 = vpop.f32.mrf.mxu0 }
0x1185   :  { %1424 = vtanh.f32 %v1095_v35  ;;  %v1090_v37 = vadd.f32 %v1089_v36, %v1682_v33 }
0x1186   :  { %v1369_v38 = vpop.f32.mrf.mxu0 }
0x1187   :  { %1426 = vtanh.f32 %v1090_v37  ;;  %v1105_v18 = vadd.f32 %v1369_v38, %v1682_v33 }
0x1188   :  { %v1099_v39 = vpop.f32.mrf.mxu0 }
0x1189   :  { %1428 = vtanh.f32 %v1105_v18  ;;  %v1100_v40 = vadd.f32 %v1099_v39, %v1682_v33 }
0x118a   :  { %v1372_v41 = vpop.f32.mrf.mxu0 }
0x118b   :  { %1430 = vtanh.f32 %v1100_v40  ;;  %v1115_v42 = vadd.f32 %v1372_v41, %v1682_v33 }
0x118c   :  { %v1423_v43 = vpop.eup %1422  ;;  %v1109_v44 = vpop.f32.mrf.mxu0 }
0x118d   :  { %v857_v45 = vadd.f32 1.0, %v1423_v43  ;;  %1432 = vtanh.f32 %v1115_v42  ;;  %v1110_v46 = vadd.f32 %v1109_v44, %v1682_v33 }
0x118f   :  { %1434 = vrcp.f32 %v857_v45 }
0x1190   :  { %1436 = vtanh.f32 %v1110_v46 }
0x1192   :  { %v1425_v47 = vpop.eup %1424 }
0x1193   :  { %1137 = vst [vmem:[%s1733_s2 + $0x8] sm:$0xff] %v1425_v47 }
0x1194   :  { %v1427_v48 = vpop.eup %1426 }
0x1195   :  { %1136 = vst [vmem:[%s1733_s2] sm:$0xff] %v1427_v48 }
0x1196   :  { %v1429_v49 = vpop.eup %1428 }
0x1197   :  { %1139 = vst [vmem:[%s1733_s2 + $0x18] sm:$0xff] %v1429_v49 }
0x1198   :  { %v1431_v50 = vpop.eup %1430 }
0x1199   :  { %1138 = vst [vmem:[%s1733_s2 + $0x10] sm:$0xff] %v1431_v50 }
0x119a   :  { %v1433_v51 = vpop.eup %1432 }
0x119b   :  { %1141 = vst [vmem:[%s1733_s2 + $0x28] sm:$0xff] %v1433_v51 }
0x119c   :  { %v1435_v52 = vpop.eup %1434 }
0x119d   :  { %v1437_v53 = vpop.eup %1436  ;;  %v860_v54 = vmul.f32 2.0, %v1435_v52  ;;  %v862_v57 = vmul.f32 %v1435_v52, %v1653_v2 }
0x119e   :  { %1140 = vst [vmem:[%s1733_s2 + $0x20] sm:$0xff] %v1437_v53 }
0x119f   :  { %v1175_v15 = vadd.f32 -1.0, %v860_v54 }
0x11a1   :  { %864 = vrot.lane.b32.xlu0 %v1175_v15, %s1452_s7 }
0x1213   :  { %v865_v55 = vpop.permute.xlu0 %864 }
0x1214   :  { %v867_v56 = vmul.f32 %v1435_v52, %v865_v55 }
0x1216   :  { %869 = vrot.lane.b32.xlu1 %v867_v56, %s1453_s8 }
0x1288   :  { %v870_v58 = vpop.permute.xlu1 %869 }
0x1289   :  { %v872_v59 = vadd.f32 %v870_v58, %v862_v57 }
0x128b   :  { %1438 = vtanh.f32 %v872_v59 }
0x1298   :  { %v1439_v60 = vpop.eup %1438 }
0x1299   :  { %875 = vrot.lane.b32.xlu0 %v1439_v60, %s1452_s7 }
0x130b   :  { %v876_v5 = vpop.permute.xlu0 %875 }
0x130c   :  { %v878_v61 = vmul.f32 %v1435_v52, %v876_v5 }
0x130e   :  { %880 = vrot.lane.b32.xlu1 %v878_v61, %s1453_s8 }
0x1380   :  { %v881_v62 = vpop.permute.xlu1 %880 }
0x1381   :  { %883 = vst.msk [vmem:[#allocation2 + $0x30] sm:$0xff] %vm161_vm2, %v881_v62  ;;  %1354 = vmatmul.mubr.msk.f32.vlgmr.msra.gmra.mxu1 %vm161_vm2, %v881_v62 }
0x1388   :  { %v993_v63 = vld [vmem:[#allocation2 + $0x30] sm:$0xff] }
0x1389   :  { %1373 = vmatprep.mubr.msk.f32.mxu0 %vm161_vm2, %v993_v63 }
0x1441   :  { %v952_v0 = vpop.f32.mrf.mxu1 }
0x1442   :  { %v956_v8 = vadd.f32 %v1557_v16, %v952_v0 }
0x1443   :  { %v1355_v1 = vpop.f32.mrf.mxu1 }
0x1444   :  { %v1177_v12 = vmul.f32 -1.442695, %v956_v8 }
0x1446   :  { %1440 = vpow2.f32 %v1177_v12 }
0x1453   :  { %v1441_v7 = vpop.eup %1440 }
0x1454   :  { %v960_v13 = vadd.f32 1.0, %v1441_v7 }
0x1456   :  { %1442 = vrcp.f32 %v960_v13 }
0x1463   :  { %v1443_v2 = vpop.eup %1442 }
0x1464   :  { %v963_v14 = vmul.f32 2.0, %v1443_v2  ;;  %v965_v9 = vmul.f32 %v1443_v2, %v872_v59 }
0x1466   :  { %v1178_v3 = vadd.f32 -1.0, %v963_v14 }
0x1468   :  { %967 = vrot.lane.b32.xlu0 %v1178_v3, %s1452_s7 }
0x14da   :  { %v968_v4 = vpop.permute.xlu0 %967 }
0x14db   :  { %v970_v6 = vmul.f32 %v1443_v2, %v968_v4 }
0x14dd   :  { %972 = vrot.lane.b32.xlu1 %v970_v6, %s1453_s8 }
0x154f   :  { %v973_v10 = vpop.permute.xlu1 %972 }
0x1550   :  { %v975_v11 = vadd.f32 %v973_v10, %v965_v9 }
0x1552   :  { %1444 = vtanh.f32 %v975_v11 }
0x155f   :  { %v1445_v16 = vpop.eup %1444 }
0x1560   :  { %978 = vrot.lane.b32.xlu0 %v1445_v16, %s1452_s7 }
0x15d2   :  { %v979_v17 = vpop.permute.xlu0 %978 }
0x15d3   :  { %v981_v19 = vmul.f32 %v1443_v2, %v979_v17 }
0x15d5   :  { %983 = vrot.lane.b32.xlu1 %v981_v19, %s1453_s8 }
0x1647   :  { %v984_v20 = vpop.permute.xlu1 %983 }
0x1648   :  { %986 = vst.msk [vmem:[#allocation2 + $0x38] sm:$0xff] %vm161_vm2, %v984_v20 }
0x164f   :  { %v994_v21 = vld [vmem:[#allocation2 + $0x38] sm:$0xff] }
0x1650   :  { %1374 = vmatmul.mubr.msk.f32.gmra.mxu0 %vm161_vm2, %v994_v21 }
0x1710   :  { %v1375_v22 = vpop.f32.mrf.mxu0 }
0x1711   :  { %v1125_v23 = vadd.f32 %v1375_v22, %v1682_v33 }
0x1712   :  { %v1119_v24 = vpop.f32.mrf.mxu0 }
0x1713   :  { %1446 = vtanh.f32 %v1125_v23  ;;  %v1120_v25 = vadd.f32 %v1119_v24, %v1682_v33 }
0x1715   :  { %1448 = vtanh.f32 %v1120_v25 }
0x1720   :  { %v1447_v26 = vpop.eup %1446 }
0x1721   :  { %1143 = vst [vmem:[%s1733_s2 + $0x38] sm:$0xff] %v1447_v26 }
0x1722   :  { %v1449_v27 = vpop.eup %1448 }
0x1723   :  { %1142 = vst [vmem:[%s1733_s2 + $0x30] sm:$0xff] %v1449_v27 }

</bundles_post_ra>
